<compile_context>
chip_gen: v7x
topology: tpu7x:2x2x1
jax: 0.10.0
libtpu: 0.0.40
codegen_flags: <defaults>
</compile_context>

<pallas_src>
import functools
import math

import jax
import jax.numpy as jnp
from jax import lax
from jax.experimental import pallas as pl
from jax.experimental.pallas import tpu as pltpu


def _linear_kernel(x_ref, w_ref, b_ref, o_ref, *, k_size, tk, mask_k_tail):
    """One (tm, tn) output tile; K streamed over grid axis 2 ("arbitrary")."""
    k = pl.program_id(2)

    @pl.when(k == 0)
    def _():
        # Fold the bias into the accumulator init: o_ref is the f32
        # VMEM-resident accumulator for this (i, j) tile across the K sweep,
        # so the final step is a pure (lane-dense) store with no extra VPU add.
        o_ref[...] = jnp.broadcast_to(b_ref[...], o_ref.shape)

    x = x_ref[...]
    w = w_ref[...]
    if mask_k_tail:
        # The last K block may extend past the array (no wrapper padding);
        # zero BOTH operands' tail so stale VMEM garbage (possibly NaN/Inf)
        # can never reach the accumulator.  Statically elided when K % tk == 0.
        kbase = k * tk
        col = lax.broadcasted_iota(jnp.int32, x.shape, dimension=1)
        row = lax.broadcasted_iota(jnp.int32, w.shape, dimension=0)
        x = jnp.where(kbase + col < k_size, x, jnp.zeros_like(x))
        w = jnp.where(kbase + row < k_size, w, jnp.zeros_like(w))

    o_ref[...] += jnp.dot(x, w, preferred_element_type=jnp.float32)


def custom_linear2(
    x: jax.Array,
    weight: jax.Array,
    bias: jax.Array,
    *,
    tm: int = 512,
    tn: int = 512,
    tk: int = 256,
    compute_dtype=jnp.bfloat16,
) -> jax.Array:
    """Forward of CustomLinear2: matmul(x, weight) + bias.

    x:      [..., in_channel]            float32
    weight: [in_channel, out_channel]    float32
    bias:   [out_channel]                float32
    returns [..., out_channel]           float32 (f32 accumulation; x/W are
            fed to the MXU in `compute_dtype`, bfloat16 by default).
    """
    in_channel, out_channel = weight.shape
    assert x.shape[-1] == in_channel
    lead_shape = x.shape[:-1]
    M = math.prod(lead_shape) if lead_shape else 1
    K, N = in_channel, out_channel

    x2d = x.reshape(M, K).astype(compute_dtype)
    w = weight.astype(compute_dtype)
    b2d = bias.reshape(1, N).astype(jnp.float32)

    # Tile selection: a block equal to the full array dim is always legal, so
    # clamp to the problem size; otherwise keep (8,128)-aligned defaults.
    # Partial M/N edge blocks are handled by masked writeback; only the K tail
    # needs explicit in-kernel masking.
    tm_e = tm if M > tm else M
    tn_e = tn if N > tn else N
    tk_e = tk if K > tk else K

    gm, gn, gk = pl.cdiv(M, tm_e), pl.cdiv(N, tn_e), pl.cdiv(K, tk_e)

    # v7x megacore: make sure at least one "parallel" axis has >= 2 blocks so
    # both TensorCores get work on small-M inference shapes.
    if gm == 1 and gn == 1 and N > 256:
        tn_e = max(128, (tn_e // 2) // 128 * 128)
        gn = pl.cdiv(N, tn_e)

    mask_k_tail = (K % tk_e) != 0

    kernel = functools.partial(
        _linear_kernel, k_size=K, tk=tk_e, mask_k_tail=mask_k_tail
    )

    in_bytes = jnp.dtype(compute_dtype).itemsize
    cost = pl.CostEstimate(
        flops=2 * M * N * K,
        transcendentals=0,
        bytes_accessed=(M * K + K * N) * in_bytes + M * N * 4 + N * 4,
    )

    out = pl.pallas_call(
        kernel,
        out_shape=jax.ShapeDtypeStruct((M, N), jnp.float32),
        grid=(gm, gn, gk),
        in_specs=[
            pl.BlockSpec((tm_e, tk_e), lambda i, j, k: (i, k)),  # x tile
            pl.BlockSpec((tk_e, tn_e), lambda i, j, k: (k, j)),  # W tile
            pl.BlockSpec((1, tn_e), lambda i, j, k: (0, j)),     # bias tile
        ],
        out_specs=pl.BlockSpec((tm_e, tn_e), lambda i, j, k: (i, j)),
        compiler_params=pltpu.CompilerParams(
            dimension_semantics=("parallel", "parallel", "arbitrary"),
            vmem_limit_bytes=32 * 1024 * 1024,
        ),
        cost_estimate=cost,
    )(x2d, w, b2d)

    return out.reshape(*lead_shape, out_channel)


if __name__ == "__main__":
    # Small demo shapes consistent with the module: x [..., in_channel].
    in_channel, out_channel = 32, 64
    key = jax.random.PRNGKey(0)
    kx, kw, kb = jax.random.split(key, 3)

    # Deterministic parameter init mirroring reset_parameters(): uniform(-1, 1).
    weight = jax.random.uniform(
        kw, (in_channel, out_channel), dtype=jnp.float32, minval=-1.0, maxval=1.0
    )
    bias = jax.random.uniform(
        kb, (out_channel,), dtype=jnp.float32, minval=-1.0, maxval=1.0
    )
    x = jax.random.normal(kx, (2, 8, in_channel), dtype=jnp.float32)

    # Default (bf16 inputs, f32 accumulation) path.
    out_bf16 = jax.block_until_ready(custom_linear2(x, weight, bias))
    # Exact f32 path (matches the PyTorch reference bit-for-bit tolerances).
    out_f32 = jax.block_until_ready(
        custom_linear2(x, weight, bias, compute_dtype=jnp.float32)
    )

    ref = jnp.matmul(x, weight) + bias
    ref_bf16 = (
        jnp.matmul(
            x.astype(jnp.bfloat16),
            weight.astype(jnp.bfloat16),
            preferred_element_type=jnp.float32,
        )
        + bias
    )

    assert out_f32.shape == (2, 8, out_channel)
    assert out_bf16.shape == (2, 8, out_channel)
    assert jnp.allclose(out_f32, ref, atol=1e-5, rtol=1e-5)
    assert jnp.allclose(out_bf16, ref_bf16, atol=1e-4, rtol=1e-4)
    assert jnp.allclose(out_bf16, ref, atol=5e-2, rtol=5e-2)

    # TODO(synk): LinearOp's custom backward is not implemented (forward only).
    print("KERNEL_OK")
</pallas_src>

<mosaic_0001>
module attributes {stable_mosaic.version = 11 : i64} {
  func.func @_linear_kernel(%arg0: i32, %arg1: i32, %arg2: i32, %arg3: memref<16x32xbf16, #tpu.memory_space<vmem>>, %arg4: memref<32x64xbf16, #tpu.memory_space<vmem>>, %arg5: memref<1x64xf32, #tpu.memory_space<vmem>>, %arg6: memref<16x64xf32, #tpu.memory_space<vmem>>) attributes {dimension_semantics = [#tpu.dimension_semantics<parallel>, #tpu.dimension_semantics<parallel>, #tpu.dimension_semantics<arbitrary>], iteration_bounds = array<i64: 1, 1, 1>, scalar_prefetch = 0 : i64, scratch_operands = 0 : i64, tpu.core_type = #tpu.core_type<tc>, window_params = [{transform_indices = @transform_0, window_bounds = array<i64: 16, 32>}, {transform_indices = @transform_1, window_bounds = array<i64: 32, 64>}, {transform_indices = @transform_2, window_bounds = array<i64: 1, 64>}, {transform_indices = @transform_3, window_bounds = array<i64: 16, 64>}]} {
    %c0_i32 = arith.constant 0 : i32
    %0 = arith.cmpi eq, %arg2, %c0_i32 : i32
    %1 = arith.extui %0 : i1 to i32
    %c0_i32_0 = arith.constant 0 : i32
    %2 = arith.cmpi ne, %1, %c0_i32_0 : i32
    scf.if %2 {
      %c0_8 = arith.constant 0 : index
      %c0_9 = arith.constant 0 : index
      %9 = vector.load %arg5[%c0_8, %c0_9] : memref<1x64xf32, #tpu.memory_space<vmem>>, vector<1x64xf32>
      %10 = vector.shape_cast %9 : vector<1x64xf32> to vector<1x64xf32>
      %11 = vector.broadcast %10 : vector<1x64xf32> to vector<16x64xf32>
      %c0_10 = arith.constant 0 : index
      %c0_11 = arith.constant 0 : index
      %12 = vector.load %arg6[%c0_10, %c0_11] : memref<16x64xf32, #tpu.memory_space<vmem>>, vector<16x64xf32>
      tpu.vector_store %arg6[%c0_10, %c0_11], %11 {strides = array<i32>} : memref<16x64xf32, #tpu.memory_space<vmem>>, vector<16x64xf32>,
    } else {
    }
    %c0 = arith.constant 0 : index
    %c0_1 = arith.constant 0 : index
    %3 = vector.load %arg3[%c0, %c0_1] : memref<16x32xbf16, #tpu.memory_space<vmem>>, vector<16x32xbf16>
    %c0_2 = arith.constant 0 : index
    %c0_3 = arith.constant 0 : index
    %4 = vector.load %arg4[%c0_2, %c0_3] : memref<32x64xbf16, #tpu.memory_space<vmem>>, vector<32x64xbf16>
    %c0_4 = arith.constant 0 : index
    %c0_5 = arith.constant 0 : index
    %5 = vector.load %arg6[%c0_4, %c0_5] : memref<16x64xf32, #tpu.memory_space<vmem>>, vector<16x64xf32>
    %cst = arith.constant dense<0.000000e+00> : vector<16x64xf32>
    %6 = tpu.matmul %3, %4, %cst {dimension_numbers = #tpu.dot_dimension_numbers<[1], [0], [0], [1], [0, 0, 1, 1], [], []>} : vector<16x32xbf16>, vector<32x64xbf16>, vector<16x64xf32> -> vector<16x64xf32>
    %7 = arith.addf %5, %6 : vector<16x64xf32>
    %c0_6 = arith.constant 0 : index
    %c0_7 = arith.constant 0 : index
    %8 = vector.load %arg6[%c0_6, %c0_7] : memref<16x64xf32, #tpu.memory_space<vmem>>, vector<16x64xf32>
    tpu.vector_store %arg6[%c0_6, %c0_7], %7 {strides = array<i32>} : memref<16x64xf32, #tpu.memory_space<vmem>>, vector<16x64xf32>,
    return
  }
  func.func @transform_0(%arg0: i32, %arg1: i32, %arg2: i32) -> (i32, i32) {
    %c0_i32 = arith.constant 0 : i32
    return %arg0, %arg2 : i32, i32
  }
  func.func @transform_1(%arg0: i32, %arg1: i32, %arg2: i32) -> (i32, i32) {
    %c0_i32 = arith.constant 0 : i32
    return %arg2, %arg1 : i32, i32
  }
  func.func @transform_2(%arg0: i32, %arg1: i32, %arg2: i32) -> (i32, i32) {
    %c0_i32 = arith.constant 0 : i32
    %c0_i32_0 = arith.constant 0 : i32
    return %c0_i32, %arg1 : i32, i32
  }
  func.func @transform_3(%arg0: i32, %arg1: i32, %arg2: i32) -> (i32, i32) {
    %c0_i32 = arith.constant 0 : i32
    return %arg0, %arg1 : i32, i32
  }
}

</mosaic_0001>

<bundles_post_ra>
// kernel: tpu_custom_call.1
= control target key start
LH: loop header
LB: loop body
LE: loop exit
PB: predicated region body
PF: predicated region fallthrough
CT: control target
= control target key end

     0   :  { %8 = vsyncpa [#allocation3], 0  ;;  %s323_s0 = inlined_call_operand.hbm [shape: bf16[16,32], index: 0, kind: input, shape index: {}]   ;;  %s324_s1 = inlined_call_operand.hbm [shape: bf16[32,64], index: 1, kind: input, shape index: {}]   ;;  %s325_s2 = inlined_call_operand.vmem [shape: f32[1,64], index: 2, kind: input, shape index: {}]   ;;  %s326_s3 = inlined_call_operand.hbm [shape: f32[16,64], index: 3, kind: output, shape index: {}]  }
   0x1   :  { %9 = vsyncpa [#allocation6], 0 }
   0x2   :  { %10 = vsyncpa [#allocation4], 0  ;;  %s251_s12 = smov [#allocation2]   ;;  %s179_s16 = scalar_lea.hbm %s323_s0, 128 }
   0x3   :  { %s16_s13 = sshll.u32 %s251_s12, 4  ;;  %p180_p0 = scmp.ne.s32.totalorder %s323_s0, %s179_s16  ;;  %s17_s13 = int_to_ptr.vmem [resolvable:$true] %s16_s13 }
   0x4   :  { %p183_p1 = scmp.lt.u32.totalorder %s179_s16, %s323_s0 }
   0x6   :  { %p185_p2 = pnand %p183_p1, %p180_p0 }
   0x8   :  { %188 = shalt.err (!%p185_p2)
}
   0x9   :  { %s189_s21 = scalar_lea.vmem %s17_s13, 128  ;;  %p194_p4 = scmp.lt.s32.totalorder %s17_s13, %s17_s13 }
   0xa   :  { %p190_p3 = scmp.ne.s32.totalorder %s17_s13, %s189_s21  ;;  %p195_p5 = scmp.lt.s32.totalorder %s189_s21, %s189_s21 }
   0xc   :  { %p196_p6 = por %p195_p5, %p194_p4 }
   0xe   :  { %p197_p7 = pnand %p196_p6, %p190_p3 }
  0x10   :  { %200 = shalt.err (!%p197_p7)
}
  0x11   :  { %s252_s22 = smov 64   ;;  %s253_s23 = smov 4  }
  0x12   :  { %22 = dma.hbm_to_vmem [thread:$0]  %s323_s0, 128, %s17_s13, [#allocation3], %s252_s22, %s252_s22, %s253_s23  }
  0x13   :  { %s254_s26 = smov [#allocation5]   ;;  %s201_s30 = scalar_lea.hbm %s324_s1, 256 }
  0x14   :  { %s28_s27 = sshll.u32 %s254_s26, 4  ;;  %p202_p8 = scmp.ne.s32.totalorder %s324_s1, %s201_s30  ;;  %s29_s27 = int_to_ptr.vmem [resolvable:$true] %s28_s27 }
  0x15   :  { %p205_p9 = scmp.lt.u32.totalorder %s201_s30, %s324_s1 }
  0x17   :  { %p207_p10 = pnand %p205_p9, %p202_p8 }
  0x19   :  { %210 = shalt.err (!%p207_p10)
}
  0x1a   :  { %s211_s8 = scalar_lea.vmem %s29_s27, 256  ;;  %p216_p12 = scmp.lt.s32.totalorder %s29_s27, %s29_s27 }
  0x1b   :  { %p212_p11 = scmp.ne.s32.totalorder %s29_s27, %s211_s8  ;;  %p217_p13 = scmp.lt.s32.totalorder %s211_s8, %s211_s8 }
  0x1d   :  { %p218_p0 = por %p217_p13, %p216_p12 }
  0x1f   :  { %p219_p1 = pnand %p218_p0, %p212_p11 }
  0x21   :  { %222 = shalt.err (!%p219_p1)
}
  0x22   :  { %34 = dma.hbm_to_vmem [thread:$0]  %s324_s1, 256, %s29_s27, [#allocation6], %s252_s22, %s252_s22, %s253_s23  }
  0x23   :  { %245 = dma.done.wait [#allocation3], 128  }
  0x24   :  { %246 = vsyncadd [#allocation3], 4294967168 }
  0x25   :  { %247 = dma.done.wait [#allocation6], 256  }
  0x26   :  { %248 = vsyncadd [#allocation6], 4294967040  ;;  %v255_v0 = vmov 0.0   ;;  %vm256_vm0 = vmmov 0   ;;  %v176_v1 = vld [vmem:[#allocation5] sm:$0xff]   ;;  %vm55_vm1 = vcmask 523264  }
  0x27   :  { %159 = vmatprep.subr.bf16.mxu0 %v255_v0  ;;  %163 = vmatprep.mubr.msk.bf16.mxu0 %vm256_vm0, %v255_v0  ;;  %v177_v2 = vld [vmem:[#allocation5 + $0x8] sm:$0xff]   ;;  %v151_v3 = vld [vmem:[%s325_s2] ss:$0 sm:$0xff]  ;;  %vm83_vm2 = vcmask 261120   ;;  %s257_s1 = smov [#allocation7]  }
  0x28   :  { %160 = vmatpush3.bf16.msra.mxu0 %v176_v1  ;;  %56 = vst.msk [vmem:[#allocation7] sm:$0xff] %vm55_vm1, %v151_v3  ;;  %57 = vst.msk [vmem:[#allocation7 + $0x8] sm:$0xff] %vm55_vm1, %v151_v3  ;;  %v178_v4 = vld [vmem:[#allocation2] sm:$0xff]   ;;  %s138_s12 = sshll.u32 %s257_s1, 4  ;;  %s139_s12 = int_to_ptr.vmem [resolvable:$true] %s138_s12 }
  0x29   :  { %161 = vmatprep.subr.bf16.mxu0 %v255_v0  ;;  %s223_s2 = scalar_lea.vmem %s139_s12, 256  ;;  %p228_p3 = scmp.lt.s32.totalorder %s139_s12, %s139_s12 }
  0x2a   :  { %p224_p2 = scmp.ne.s32.totalorder %s139_s12, %s223_s2  ;;  %p229_p4 = scmp.lt.s32.totalorder %s223_s2, %s223_s2 }
  0x2c   :  { %162 = vmatpush3.bf16.msra.mxu0 %v177_v2  ;;  %p230_p5 = por %p229_p4, %p228_p3 }
  0x2e   :  { %p231_p6 = pnand %p230_p5, %p224_p2 }
  0x2f   :  { %164 = vmatmul.mubr.msk.bf16.vlgmr.msra.gmra.mrb[0].mxu0 %vm83_vm2, %v178_v4  ;;  %v64_v5 = vld [vmem:[#allocation7] sm:$0xff]  ;;  %v65_v7 = vld [vmem:[#allocation7 + $0x8] sm:$0xff] }
 0x102   :  { %v121_v6 = vpop.f32.mrb[0].mxu0 }
 0x103   :  { %v128_v8 = vadd.f32 %v121_v6, %v64_v5  ;;  %v165_v9 = vpop.f32.mrb[1].mxu0 }
 0x104   :  { %v124_v10 = vpop.f32.mrb[2].mxu0 }
 0x105   :  { %131 = vst.msk [vmem:[#allocation7] sm:$0xff] %vm55_vm1, %v128_v8  ;;  %v129_v11 = vadd.f32 %v124_v10, %v65_v7  ;;  %v166_v12 = vpop.f32.mrb[3].mxu0 }
 0x107   :  { %132 = vst.msk [vmem:[#allocation7 + $0x8] sm:$0xff] %vm55_vm1, %v129_v11 }
 0x108   :  { %234 = shalt.err (!%p231_p6)
}
 0x109   :  { %s235_s15 = scalar_lea.hbm %s326_s3, 256 }
 0x10a   :  { %p236_p7 = scmp.ne.s32.totalorder %s326_s3, %s235_s15  ;;  %p239_p8 = scmp.lt.u32.totalorder %s235_s15, %s326_s3 }
 0x10c   :  { %p241_p9 = pnand %p239_p8, %p236_p7 }
 0x10e   :  { %244 = shalt.err (!%p241_p9)
}
 0x10f   :  { %s258_s20 = smov 128   ;;  %s259_s21 = smov 8  }
 0x110   :  { %144 = dma.vmem_to_hbm [thread:$0]  %s139_s12, 256, %s326_s3, [#allocation4], %s258_s20, %s258_s20, %s259_s21  }
 0x111   :  { %249 = dma.done.wait [#allocation4], 256  }
 0x112   :  { %250 = vsyncadd [#allocation4], 4294967040 }
 0x113   :  { %148 = vsyncpa [#allocation3], 1 }
 0x114   :  { %149 = vsyncpa [#allocation6], 1 }
 0x115   :  { %150 = vsyncpa [#allocation4], 1 }

</bundles_post_ra>
